<compile_context>
chip_gen: v7x
topology: tpu7x:2x2x1
jax: 0.10.0
libtpu: 0.0.40
codegen_flags: <defaults>
</compile_context>

<pallas_src>
import jax
import jax.numpy as jnp
from jax import lax
from jax.experimental import pallas as pl
from jax.experimental.pallas import tpu as pltpu


# --------------------------------------------------------------------------- #
# Kernels
# --------------------------------------------------------------------------- #
def ffn_resident_kernel(x_ref, w1_ref, b1_ref, w2_ref, b2_ref, o_ref, acc_ref):
    # x_ref:  [tm, Ep]
    # w1_ref: [n_ch, Ep, th]   b1_ref: [n_ch, 1, th]
    # w2_ref: [n_ch, th, Ep]   b2_ref: [1, Ep]
    # o_ref:  [tm, Ep]         acc_ref: VMEM f32 [tm, Ep]
    x = x_ref[...]
    n_ch = w1_ref.shape[0]

    # Fold the second bias into the accumulator init (saves a full-tile add).
    acc_ref[...] = jnp.broadcast_to(b2_ref[...].astype(jnp.float32), acc_ref.shape)

    def chunk(c, carry):
        h = jnp.dot(x, w1_ref[c], preferred_element_type=jnp.float32)
        h = h + b1_ref[c].astype(jnp.float32)
        a = h * jax.nn.sigmoid(h)  # SiLU: VPU mul + EUP sigmoid, f32
        acc_ref[...] += jnp.dot(a.astype(w2_ref.dtype), w2_ref[c],
                                preferred_element_type=jnp.float32)
        return carry

    lax.fori_loop(0, n_ch, chunk, 0, unroll=(n_ch <= 8))
    o_ref[...] = acc_ref[...].astype(o_ref.dtype)


def ffn_streamed_kernel(x_ref, w1_ref, b1_ref, w2_ref, b2_ref, o_ref, acc_ref):
    # One hidden chunk per grid step along axis 1 ("arbitrary" reduction axis).
    # w1_ref: [1, Ep, th]  b1_ref: [1, 1, th]  w2_ref: [1, th, Ep]
    h_idx = pl.program_id(1)

    @pl.when(h_idx == 0)
    def _():
        acc_ref[...] = jnp.broadcast_to(b2_ref[...].astype(jnp.float32),
                                        acc_ref.shape)

    h = jnp.dot(x_ref[...], w1_ref[0], preferred_element_type=jnp.float32)
    h = h + b1_ref[0].astype(jnp.float32)
    a = h * jax.nn.sigmoid(h)
    acc_ref[...] += jnp.dot(a.astype(w2_ref.dtype), w2_ref[0],
                            preferred_element_type=jnp.float32)

    @pl.when(h_idx == pl.num_programs(1) - 1)
    def _():
        o_ref[...] = acc_ref[...].astype(o_ref.dtype)


# --------------------------------------------------------------------------- #
# Wrapper
# --------------------------------------------------------------------------- #
def _round_up(v, m):
    return -(-v // m) * m


def _vmem_capacity_bytes():
    try:
        info = pltpu.get_tpu_info()
        cap = getattr(info, "vmem_capacity_bytes", None)
        if cap:
            return int(cap)
    except Exception:
        pass
    return 64 << 20  # conservative fallback (v7x per-TensorCore VMEM)


def prepare_ffn_params(w1, b1, w2, b2, *, th=512, compute_dtype=None):
    """Pad + chunk the weights ONCE (reuse across calls).

    w1: [E, H], b1: [H], w2: [H, E], b2: [E]  (already transposed vs PyTorch).
    Returns a dict of padded, hidden-chunked parameters.
    """
    E, H = w1.shape
    assert w2.shape == (H, E) and b1.shape == (H,) and b2.shape == (E,)
    if compute_dtype is not None:
        w1 = w1.astype(compute_dtype)
        b1 = b1.astype(compute_dtype)
        w2 = w2.astype(compute_dtype)
        b2 = b2.astype(compute_dtype)

    Ep = _round_up(E, 128)
    th = min(_round_up(max(th, 128), 128), _round_up(H, 128))
    Hp = _round_up(H, th)          # Hp is a multiple of th (and of 128)
    n_ch = Hp // th

    w1p = jnp.pad(w1, ((0, Ep - E), (0, Hp - H)))
    w2p = jnp.pad(w2, ((0, Hp - H), (0, Ep - E)))
    b1p = jnp.pad(b1, (0, Hp - H))
    b2p = jnp.pad(b2, (0, Ep - E))

    return dict(
        w1c=w1p.reshape(Ep, n_ch, th).transpose(1, 0, 2),  # [n_ch, Ep, th]
        b1c=b1p.reshape(n_ch, 1, th),                       # [n_ch, 1, th]
        w2c=w2p.reshape(n_ch, th, Ep),                      # [n_ch, th, Ep]
        b2=b2p.reshape(1, Ep),                              # [1, Ep]
        E=E, H=H, Ep=Ep, Hp=Hp, th=th, n_ch=n_ch,
    )


def ffn_pallas(x, params, *, tm=256):
    """x: [N, E] -> [N, E] using pre-prepared params (see prepare_ffn_params)."""
    N, E = x.shape
    assert E == params["E"]
    Ep, th, n_ch = params["Ep"], params["th"], params["n_ch"]
    Hp = params["Hp"]
    w1c, b1c, w2c, b2p = params["w1c"], params["b1c"], params["w2c"], params["b2"]

    # ---- token tiling: MXU aligned, >=2 tiles when possible (v7x megacore) ----
    tm = max(16, _round_up(tm, 16))
    aligned_n = _round_up(max(N, 1), 16)
    if aligned_n >= 2 * tm:
        tm_eff = tm
    elif aligned_n >= 64:
        tm_eff = _round_up(pl.cdiv(aligned_n, 2), 16)  # split so both TCs get work
    else:
        tm_eff = aligned_n
    n_tiles = pl.cdiv(N, tm_eff)
    Np = n_tiles * tm_eff

    xp = jnp.pad(x, ((0, Np - N), (0, Ep - E)))
    if xp.dtype != w1c.dtype:
        xp = xp.astype(w1c.dtype)  # native MXU dtype path (e.g. bf16 weights)

    bx = jnp.dtype(xp.dtype).itemsize
    bo = jnp.dtype(x.dtype).itemsize
    bw = jnp.dtype(w1c.dtype).itemsize

    vmem_cap = _vmem_capacity_bytes()

    tile_bytes = 2 * tm_eff * Ep * bx + 2 * tm_eff * Ep * bo   # x/out, dbl-buffered
    acc_bytes = tm_eff * Ep * 4
    interm_bytes = 2 * tm_eff * th * 4 + tm_eff * th * bw      # h, a, a.astype
    resident_w_bytes = (Ep * Hp + Hp * Ep + Hp + Ep) * bw      # single-buffered
    margin = 2 << 20

    resident_est = tile_bytes + acc_bytes + interm_bytes + resident_w_bytes + margin
    use_resident = resident_est <= int(0.70 * vmem_cap)

    if use_resident:
        est = resident_est
        grid = (n_tiles,)
        in_specs = [
            pl.BlockSpec((tm_eff, Ep), lambda i: (i, 0)),
            pl.BlockSpec((n_ch, Ep, th), lambda i: (0, 0, 0),
                         pipeline_mode=pl.Buffered(1)),
            pl.BlockSpec((n_ch, 1, th), lambda i: (0, 0, 0),
                         pipeline_mode=pl.Buffered(1)),
            pl.BlockSpec((n_ch, th, Ep), lambda i: (0, 0, 0),
                         pipeline_mode=pl.Buffered(1)),
            pl.BlockSpec((1, Ep), lambda i: (0, 0),
                         pipeline_mode=pl.Buffered(1)),
        ]
        out_spec = pl.BlockSpec((tm_eff, Ep), lambda i: (i, 0))
        dims = ("parallel",)
        kernel = ffn_resident_kernel
    else:
        streamed_w_bytes = 2 * (Ep * th + th * Ep + th) * bw + Ep * bw
        est = tile_bytes + acc_bytes + interm_bytes + streamed_w_bytes + margin
        grid = (n_tiles, n_ch)  # reduction (hidden) axis last
        in_specs = [
            pl.BlockSpec((tm_eff, Ep), lambda i, h: (i, 0)),
            pl.BlockSpec((1, Ep, th), lambda i, h: (h, 0, 0)),
            pl.BlockSpec((1, 1, th), lambda i, h: (h, 0, 0)),
            pl.BlockSpec((1, th, Ep), lambda i, h: (h, 0, 0)),
            pl.BlockSpec((1, Ep), lambda i, h: (0, 0)),
        ]
        out_spec = pl.BlockSpec((tm_eff, Ep), lambda i, h: (i, 0))
        dims = ("parallel", "arbitrary")
        kernel = ffn_streamed_kernel

    vmem_limit = int(min(int(0.90 * vmem_cap), max(32 << 20, int(1.25 * est))))

    out = pl.pallas_call(
        kernel,
        out_shape=jax.ShapeDtypeStruct((Np, Ep), x.dtype),
        grid_spec=pltpu.PrefetchScalarGridSpec(
            num_scalar_prefetch=0,
            grid=grid,
            in_specs=in_specs,
            out_specs=out_spec,
            scratch_shapes=[pltpu.VMEM((tm_eff, Ep), jnp.float32)],
        ),
        compiler_params=pltpu.CompilerParams(
            dimension_semantics=dims,
            vmem_limit_bytes=vmem_limit,
        ),
    )(xp, w1c, b1c, w2c, b2p)

    return out[:N, :E]


def ffn_reference(x, w1, b1, w2, b2):
    h = x.astype(jnp.float32) @ w1.astype(jnp.float32) + b1.astype(jnp.float32)
    a = h * jax.nn.sigmoid(h)
    y = a @ w2.astype(jnp.float32) + b2.astype(jnp.float32)
    return y.astype(x.dtype)


# --------------------------------------------------------------------------- #
# Demo / self-test
# --------------------------------------------------------------------------- #
if __name__ == "__main__":
    # Small shapes consistent with the module: batch=2, seq=8,
    # embedding_dim=32, hidden_dim=64.
    batch, seq, embedding_dim, hidden_dim = 2, 8, 32, 64

    key = jax.random.PRNGKey(0)
    kx, kw1, kb1, kw2, kb2 = jax.random.split(key, 5)

    x = jax.random.normal(kx, (batch, seq, embedding_dim), dtype=jnp.float32)

    # Params mimicking nn.Linear's U(-1/sqrt(fan_in), 1/sqrt(fan_in)),
    # stored transposed vs PyTorch ([out,in] -> [in,out]) for row-major matmul.
    bound1 = 1.0 / (embedding_dim ** 0.5)
    bound2 = 1.0 / (hidden_dim ** 0.5)
    w1 = jax.random.uniform(kw1, (embedding_dim, hidden_dim),
                            minval=-bound1, maxval=bound1, dtype=jnp.float32)
    b1 = jax.random.uniform(kb1, (hidden_dim,),
                            minval=-bound1, maxval=bound1, dtype=jnp.float32)
    w2 = jax.random.uniform(kw2, (hidden_dim, embedding_dim),
                            minval=-bound2, maxval=bound2, dtype=jnp.float32)
    b2 = jax.random.uniform(kb2, (embedding_dim,),
                            minval=-bound2, maxval=bound2, dtype=jnp.float32)

    # Pre-pad / pre-chunk weights once, reuse across calls.
    params = prepare_ffn_params(w1, b1, w2, b2)

    # Case 1: the standard shapes (f32).
    x_flat = x.reshape(batch * seq, embedding_dim)
    out_flat = ffn_pallas(x_flat, params)
    jax.block_until_ready(out_flat)
    ref_flat = ffn_reference(x_flat, w1, b1, w2, b2)
    assert out_flat.shape == ref_flat.shape
    assert jnp.allclose(out_flat, ref_flat, atol=2e-5, rtol=2e-5), "mismatch (case 1)"

    # Case 2: token count not a multiple of the tile (exercises padding path).
    x_odd = jax.random.normal(jax.random.PRNGKey(1), (13, embedding_dim),
                              dtype=jnp.float32)
    out_odd = ffn_pallas(x_odd, params)
    jax.block_until_ready(out_odd)
    ref_odd = ffn_reference(x_odd, w1, b1, w2, b2)
    assert jnp.allclose(out_odd, ref_odd, atol=2e-5, rtol=2e-5), "mismatch (case 2)"

    # Case 3: bf16 MXU-native operand path (looser tolerance vs f32 reference).
    params_bf16 = prepare_ffn_params(w1, b1, w2, b2, compute_dtype=jnp.bfloat16)
    out_bf16 = ffn_pallas(x_flat, params_bf16)
    jax.block_until_ready(out_bf16)
    assert out_bf16.shape == ref_flat.shape
    assert jnp.allclose(out_bf16.astype(jnp.float32), ref_flat,
                        atol=1e-1, rtol=1e-1), "mismatch (case 3, bf16)"

    print("KERNEL_OK")
</pallas_src>

<mosaic_0001>
module attributes {stable_mosaic.version = 11 : i64} {
  func.func @ffn_resident_kernel(%arg0: i32, %arg1: memref<16x128xf32, #tpu.memory_space<vmem>>, %arg2: memref<1x128x128xf32, #tpu.memory_space<vmem>>, %arg3: memref<1x1x128xf32, #tpu.memory_space<vmem>>, %arg4: memref<1x128x128xf32, #tpu.memory_space<vmem>>, %arg5: memref<1x128xf32, #tpu.memory_space<vmem>>, %arg6: memref<16x128xf32, #tpu.memory_space<vmem>>, %arg7: memref<16x128xf32, #tpu.memory_space<vmem>>) attributes {dimension_semantics = [#tpu.dimension_semantics<parallel>], iteration_bounds = array<i64: 1>, scalar_prefetch = 0 : i64, scratch_operands = 1 : i64, tpu.core_type = #tpu.core_type<tc>, window_params = [{transform_indices = @transform_0, window_bounds = array<i64: 16, 128>}, {pipeline_mode = #tpu.pipeline_mode<synchronous>, transform_indices = @transform_1, window_bounds = array<i64: 1, 128, 128>}, {pipeline_mode = #tpu.pipeline_mode<synchronous>, transform_indices = @transform_2, window_bounds = array<i64: 1, 1, 128>}, {pipeline_mode = #tpu.pipeline_mode<synchronous>, transform_indices = @transform_3, window_bounds = array<i64: 1, 128, 128>}, {pipeline_mode = #tpu.pipeline_mode<synchronous>, transform_indices = @transform_4, window_bounds = array<i64: 1, 128>}, {transform_indices = @transform_5, window_bounds = array<i64: 16, 128>}]} {
    %c0 = arith.constant 0 : index
    %c0_0 = arith.constant 0 : index
    %0 = vector.load %arg1[%c0, %c0_0] : memref<16x128xf32, #tpu.memory_space<vmem>>, vector<16x128xf32>
    %c0_1 = arith.constant 0 : index
    %c0_2 = arith.constant 0 : index
    %1 = vector.load %arg5[%c0_1, %c0_2] : memref<1x128xf32, #tpu.memory_space<vmem>>, vector<1x128xf32>
    %2 = vector.shape_cast %1 : vector<1x128xf32> to vector<1x128xf32>
    %3 = vector.broadcast %2 : vector<1x128xf32> to vector<16x128xf32>
    %c0_3 = arith.constant 0 : index
    %c0_4 = arith.constant 0 : index
    %4 = vector.load %arg7[%c0_3, %c0_4] : memref<16x128xf32, #tpu.memory_space<vmem>>, vector<16x128xf32>
    tpu.vector_store %arg7[%c0_3, %c0_4], %3 {strides = array<i32>} : memref<16x128xf32, #tpu.memory_space<vmem>>, vector<16x128xf32>,
    %c0_i32 = arith.constant 0 : i32
    %5 = arith.index_cast %c0_i32 : i32 to index
    %c0_5 = arith.constant 0 : index
    %c0_6 = arith.constant 0 : index
    %6 = vector.load %arg2[%5, %c0_5, %c0_6] : memref<1x128x128xf32, #tpu.memory_space<vmem>>, vector<1x128x128xf32>
    %7 = vector.shape_cast %6 : vector<1x128x128xf32> to vector<128x128xf32>
    %cst = arith.constant dense<0.000000e+00> : vector<16x128xf32>
    %8 = tpu.matmul %0, %7, %cst {dimension_numbers = #tpu.dot_dimension_numbers<[1], [0], [0], [1], [0, 0, 1, 1], [], []>} : vector<16x128xf32>, vector<128x128xf32>, vector<16x128xf32> -> vector<16x128xf32>
    %9 = arith.index_cast %c0_i32 : i32 to index
    %c0_7 = arith.constant 0 : index
    %c0_8 = arith.constant 0 : index
    %10 = vector.load %arg3[%9, %c0_7, %c0_8] : memref<1x1x128xf32, #tpu.memory_space<vmem>>, vector<1x1x128xf32>
    %11 = vector.shape_cast %10 : vector<1x1x128xf32> to vector<1x128xf32>
    %12 = vector.broadcast %11 : vector<1x128xf32> to vector<16x128xf32>
    %13 = arith.addf %8, %12 : vector<16x128xf32>
    %14 = arith.negf %13 : vector<16x128xf32>
    %15 = math.exp %14 : vector<16x128xf32>
    %cst_9 = arith.constant 1.000000e+00 : f32
    %16 = vector.broadcast %cst_9 : f32 to vector<16x128xf32>
    %17 = arith.addf %16, %15 : vector<16x128xf32>
    %18 = arith.divf %16, %17 : vector<16x128xf32>
    %19 = arith.mulf %13, %18 : vector<16x128xf32>
    %c0_10 = arith.constant 0 : index
    %c0_11 = arith.constant 0 : index
    %20 = vector.load %arg7[%c0_10, %c0_11] : memref<16x128xf32, #tpu.memory_space<vmem>>, vector<16x128xf32>
    %21 = arith.index_cast %c0_i32 : i32 to index
    %c0_12 = arith.constant 0 : index
    %c0_13 = arith.constant 0 : index
    %22 = vector.load %arg4[%21, %c0_12, %c0_13] : memref<1x128x128xf32, #tpu.memory_space<vmem>>, vector<1x128x128xf32>
    %23 = vector.shape_cast %22 : vector<1x128x128xf32> to vector<128x128xf32>
    %cst_14 = arith.constant dense<0.000000e+00> : vector<16x128xf32>
    %24 = tpu.matmul %19, %23, %cst_14 {dimension_numbers = #tpu.dot_dimension_numbers<[1], [0], [0], [1], [0, 0, 1, 1], [], []>} : vector<16x128xf32>, vector<128x128xf32>, vector<16x128xf32> -> vector<16x128xf32>
    %25 = arith.addf %20, %24 : vector<16x128xf32>
    %c0_15 = arith.constant 0 : index
    %c0_16 = arith.constant 0 : index
    %26 = vector.load %arg7[%c0_15, %c0_16] : memref<16x128xf32, #tpu.memory_space<vmem>>, vector<16x128xf32>
    tpu.vector_store %arg7[%c0_15, %c0_16], %25 {strides = array<i32>} : memref<16x128xf32, #tpu.memory_space<vmem>>, vector<16x128xf32>,
    %c1_i32 = arith.constant 1 : i32
    %c0_17 = arith.constant 0 : index
    %c0_18 = arith.constant 0 : index
    %27 = vector.load %arg7[%c0_17, %c0_18] : memref<16x128xf32, #tpu.memory_space<vmem>>, vector<16x128xf32>
    %c0_19 = arith.constant 0 : index
    %c0_20 = arith.constant 0 : index
    %28 = vector.load %arg6[%c0_19, %c0_20] : memref<16x128xf32, #tpu.memory_space<vmem>>, vector<16x128xf32>
    tpu.vector_store %arg6[%c0_19, %c0_20], %27 {strides = array<i32>} : memref<16x128xf32, #tpu.memory_space<vmem>>, vector<16x128xf32>,
    return
  }
  func.func @transform_0(%arg0: i32) -> (i32, i32) {
    %c0_i32 = arith.constant 0 : i32
    %c0_i32_0 = arith.constant 0 : i32
    return %arg0, %c0_i32 : i32, i32
  }
  func.func @transform_1(%arg0: i32) -> (i32, i32, i32) {
    %c0_i32 = arith.constant 0 : i32
    %c0_i32_0 = arith.constant 0 : i32
    %c0_i32_1 = arith.constant 0 : i32
    %c0_i32_2 = arith.constant 0 : i32
    return %c0_i32, %c0_i32_0, %c0_i32_1 : i32, i32, i32
  }
  func.func @transform_2(%arg0: i32) -> (i32, i32, i32) {
    %c0_i32 = arith.constant 0 : i32
    %c0_i32_0 = arith.constant 0 : i32
    %c0_i32_1 = arith.constant 0 : i32
    %c0_i32_2 = arith.constant 0 : i32
    return %c0_i32, %c0_i32_0, %c0_i32_1 : i32, i32, i32
  }
  func.func @transform_3(%arg0: i32) -> (i32, i32, i32) {
    %c0_i32 = arith.constant 0 : i32
    %c0_i32_0 = arith.constant 0 : i32
    %c0_i32_1 = arith.constant 0 : i32
    %c0_i32_2 = arith.constant 0 : i32
    return %c0_i32, %c0_i32_0, %c0_i32_1 : i32, i32, i32
  }
  func.func @transform_4(%arg0: i32) -> (i32, i32) {
    %c0_i32 = arith.constant 0 : i32
    %c0_i32_0 = arith.constant 0 : i32
    %c0_i32_1 = arith.constant 0 : i32
    return %c0_i32, %c0_i32_0 : i32, i32
  }
  func.func @transform_5(%arg0: i32) -> (i32, i32) {
    %c0_i32 = arith.constant 0 : i32
    %c0_i32_0 = arith.constant 0 : i32
    return %arg0, %c0_i32 : i32, i32
  }
}

</mosaic_0001>

<bundles_post_ra>
// kernel: tpu_custom_call.1
= control target key start
LH: loop header
LB: loop body
LE: loop exit
PB: predicated region body
PF: predicated region fallthrough
CT: control target
= control target key end

     0   :  { %10 = vsyncpa [#allocation4], 0  ;;  %s695_s0 = inlined_call_operand.hbm [shape: f32[16,128], index: 0, kind: input, shape index: {}]   ;;  %s696_s1 = inlined_call_operand.hbm [shape: f32[1,128,128], index: 1, kind: input, shape index: {}]   ;;  %s697_s2 = inlined_call_operand.vmem [shape: f32[1,1,128], index: 2, kind: input, shape index: {}]   ;;  %s698_s3 = inlined_call_operand.hbm [shape: f32[1,128,128], index: 3, kind: input, shape index: {}]   ;;  %s699_s4 = inlined_call_operand.vmem [shape: f32[1,128], index: 4, kind: input, shape index: {}]   ;;  %s700_s5 = inlined_call_operand.hbm [shape: f32[16,128], index: 5, kind: output, shape index: {}]  }
   0x1   :  { %11 = vsyncpa [#allocation7], 0 }
   0x2   :  { %12 = vsyncpa [#allocation5], 0  ;;  %s586_s18 = smov [#allocation6]   ;;  %s587_s20 = smov [#allocation3]  }
   0x3   :  { %s30_s19 = sshll.u32 %s586_s18, 4  ;;  %s18_s21 = sshll.u32 %s587_s20, 4  ;;  %s31_s19 = int_to_ptr.vmem [resolvable:$true] %s30_s19  ;;  %s622_s21 = int_to_ptr.vmem [resolvable:$true] %s18_s21 }
   0x4   :  { %s492_s24 = scalar_lea.hbm %s696_s1, 2048 }
   0x5   :  { %p493_p0 = scmp.ne.s32.totalorder %s696_s1, %s492_s24  ;;  %p496_p1 = scmp.lt.u32.totalorder %s492_s24, %s696_s1 }
   0x7   :  { %p498_p2 = pnand %p496_p1, %p493_p0 }
   0x9   :  { %501 = shalt.err (!%p498_p2)
}
   0xa   :  { %s502_s29 = scalar_lea.vmem %s31_s19, 2048  ;;  %p507_p4 = scmp.lt.s32.totalorder %s31_s19, %s31_s19 }
   0xb   :  { %p503_p3 = scmp.ne.s32.totalorder %s31_s19, %s502_s29  ;;  %p508_p5 = scmp.lt.s32.totalorder %s502_s29, %s502_s29 }
   0xd   :  { %p509_p6 = por %p508_p5, %p507_p4 }
   0xf   :  { %p510_p7 = pnand %p509_p6, %p503_p3 }
  0x11   :  { %513 = shalt.err (!%p510_p7)
}
  0x12   :  { %s588_s30 = smov 128   ;;  %s589_s6 = smov 8  }
  0x13   :  { %36 = dma.hbm_to_vmem [thread:$0]  %s696_s1, 2048, %s31_s19, [#allocation7], %s588_s30, %s588_s30, %s589_s6  }
  0x14   :  { %s514_s11 = scalar_lea.hbm %s695_s0, 256 }
  0x15   :  { %p515_p8 = scmp.ne.s32.totalorder %s695_s0, %s514_s11  ;;  %p518_p9 = scmp.lt.u32.totalorder %s514_s11, %s695_s0 }
  0x17   :  { %p520_p10 = pnand %p518_p9, %p515_p8 }
  0x19   :  { %523 = shalt.err (!%p520_p10)
}
  0x1a   :  { %s524_s16 = scalar_lea.vmem %s622_s21, 256  ;;  %p529_p12 = scmp.lt.s32.totalorder %s622_s21, %s622_s21 }
  0x1b   :  { %p525_p11 = scmp.ne.s32.totalorder %s622_s21, %s524_s16  ;;  %p530_p13 = scmp.lt.s32.totalorder %s524_s16, %s524_s16 }
  0x1d   :  { %p531_p0 = por %p530_p13, %p529_p12 }
  0x1f   :  { %p532_p1 = pnand %p531_p0, %p525_p11 }
  0x21   :  { %535 = shalt.err (!%p532_p1)
}
  0x22   :  { %24 = dma.hbm_to_vmem [thread:$0]  %s695_s0, 256, %s622_s21, [#allocation4], %s588_s30, %s588_s30, %s589_s6  }
  0x23   :  { %s590_s18 = smov [#allocation8]   ;;  %s536_s23 = scalar_lea.hbm %s698_s3, 2048 }
  0x24   :  { %s44_s19 = sshll.u32 %s590_s18, 4  ;;  %p537_p2 = scmp.ne.s32.totalorder %s698_s3, %s536_s23  ;;  %s45_s19 = int_to_ptr.vmem [resolvable:$true] %s44_s19 }
  0x25   :  { %p540_p3 = scmp.lt.u32.totalorder %s536_s23, %s698_s3 }
  0x27   :  { %p542_p4 = pnand %p540_p3, %p537_p2 }
  0x29   :  { %545 = shalt.err (!%p542_p4)
}
  0x2a   :  { %s546_s28 = scalar_lea.vmem %s45_s19, 2048  ;;  %p551_p6 = scmp.lt.s32.totalorder %s45_s19, %s45_s19 }
  0x2b   :  { %p547_p5 = scmp.ne.s32.totalorder %s45_s19, %s546_s28  ;;  %p552_p7 = scmp.lt.s32.totalorder %s546_s28, %s546_s28 }
  0x2d   :  { %p553_p8 = por %p552_p7, %p551_p6 }
  0x2f   :  { %p554_p9 = pnand %p553_p8, %p547_p5 }
  0x31   :  { %557 = shalt.err (!%p554_p9)
}
  0x32   :  { %50 = dma.hbm_to_vmem [thread:$0]  %s698_s3, 2048, %s45_s19, [#allocation7], %s588_s30, %s588_s30, %s589_s6  }
  0x33   :  { %580 = dma.done.wait [#allocation4], 256  }
  0x34   :  { %581 = vsyncadd [#allocation4], 4294967040 }
  0x35   :  { %582 = dma.done.wait [#allocation7], 4096  }
  0x36   :  { %583 = vsyncadd [#allocation7], 4294963200  ;;  %v73_v0 = vld [vmem:[#allocation6] sm:$0xff]  ;;  %v74_v1 = vld [vmem:[#allocation6 + $0x8] sm:$0xff]  ;;  %s591_s8 = smov [#allocation9]  }
  0x37   :  { %v75_v2 = vld [vmem:[#allocation6 + $0x10] sm:$0xff]  ;;  %v414_v3 = vpack.c.bf16 %v74_v1, %v73_v0  ;;  %v76_v4 = vld [vmem:[#allocation6 + $0x18] sm:$0xff]  ;;  %v77_v6 = vld [vmem:[#allocation6 + $0x20] sm:$0xff]  ;;  %s291_s9 = sshll.u32 %s591_s8, 4  ;;  %s292_s9 = int_to_ptr.vmem [resolvable:$true] %s291_s9 }
  0x38   :  { %v418_v5 = vpack.c.bf16 %v76_v4, %v75_v2  ;;  %v78_v7 = vld [vmem:[#allocation6 + $0x28] sm:$0xff]  ;;  %v62_v9 = vld [vmem:[#allocation3] sm:$0xff]  ;;  %v80_v11 = vld [vmem:[#allocation6 + $0x38] sm:$0xff]  ;;  %s558_s10 = scalar_lea.vmem %s292_s9, 256  ;;  %p563_p11 = scmp.lt.s32.totalorder %s292_s9, %s292_s9 }
  0x39   :  { %415 = vmatprep.subr.bf16.mxu0 %v414_v3  ;;  %v422_v8 = vpack.c.bf16 %v78_v7, %v77_v6  ;;  %v79_v10 = vld [vmem:[#allocation6 + $0x30] sm:$0xff]  ;;  %376 = vmatprep.mubr.f32.mxu0 %v62_v9  ;;  %v81_v13 = vld [vmem:[#allocation6 + $0x40] sm:$0xff]  ;;  %v82_v14 = vld [vmem:[#allocation6 + $0x48] sm:$0xff]  ;;  %p559_p10 = scmp.ne.s32.totalorder %s292_s9, %s558_s10  ;;  %p564_p12 = scmp.lt.s32.totalorder %s558_s10, %s558_s10 }
  0x3a   :  { %417 = vmatpush3.bf16.msra.mxu0 %v414_v3  ;;  %v426_v12 = vpack.c.bf16 %v80_v11, %v79_v10  ;;  %v430_v15 = vpack.c.bf16 %v82_v14, %v81_v13  ;;  %v83_v16 = vld [vmem:[#allocation6 + $0x50] sm:$0xff]  ;;  %v84_v17 = vld [vmem:[#allocation6 + $0x58] sm:$0xff]  ;;  %v85_v19 = vld [vmem:[#allocation6 + $0x60] sm:$0xff] }
  0x3b   :  { %419 = vmatprep.subr.bf16.mxu0 %v418_v5  ;;  %v434_v18 = vpack.c.bf16 %v84_v17, %v83_v16  ;;  %v86_v20 = vld [vmem:[#allocation6 + $0x68] sm:$0xff]  ;;  %v87_v22 = vld [vmem:[#allocation6 + $0x70] sm:$0xff]  ;;  %v88_v23 = vld [vmem:[#allocation6 + $0x78] sm:$0xff]  ;;  %p565_p13 = por %p564_p12, %p563_p11 }
  0x3c   :  { %v438_v21 = vpack.c.bf16 %v86_v20, %v85_v19  ;;  %v442_v24 = vpack.c.bf16 %v88_v23, %v87_v22  ;;  %v63_v25 = vld [vmem:[#allocation3 + $0x8] sm:$0xff]  ;;  %v187_v26 = vld [vmem:[#allocation8] sm:$0xff]  ;;  %v188_v27 = vld [vmem:[#allocation8 + $0x8] sm:$0xff] }
  0x3d   :  { %v446_v28 = vpack.c.bf16 %v188_v27, %v187_v26  ;;  %v189_v29 = vld [vmem:[#allocation8 + $0x10] sm:$0xff]  ;;  %v190_v30 = vld [vmem:[#allocation8 + $0x18] sm:$0xff]  ;;  %v191_v32 = vld [vmem:[#allocation8 + $0x20] sm:$0xff]  ;;  %p566_p0 = pnand %p565_p13, %p559_p10 }
  0x3e   :  { %421 = vmatpush3.bf16.msra.mxu0 %v418_v5  ;;  %v450_v31 = vpack.c.bf16 %v190_v30, %v189_v29  ;;  %v192_v33 = vld [vmem:[#allocation8 + $0x28] sm:$0xff]  ;;  %v193_v35 = vld [vmem:[#allocation8 + $0x30] sm:$0xff]  ;;  %v194_v36 = vld [vmem:[#allocation8 + $0x38] sm:$0xff] }
  0x3f   :  { %423 = vmatprep.subr.bf16.mxu0 %v422_v8  ;;  %447 = vmatprep.subr.bf16.mxu1 %v446_v28  ;;  %v454_v34 = vpack.c.bf16 %v192_v33, %v191_v32  ;;  %v458_v37 = vpack.c.bf16 %v194_v36, %v193_v35  ;;  %v195_v38 = vld [vmem:[#allocation8 + $0x40] sm:$0xff]  ;;  %v196_v39 = vld [vmem:[#allocation8 + $0x48] sm:$0xff]  ;;  %v197_v41 = vld [vmem:[#allocation8 + $0x50] sm:$0xff] }
  0x40   :  { %449 = vmatpush3.bf16.msra.mxu1 %v446_v28  ;;  %v462_v40 = vpack.c.bf16 %v196_v39, %v195_v38  ;;  %v198_v42 = vld [vmem:[#allocation8 + $0x58] sm:$0xff]  ;;  %v199_v44 = vld [vmem:[#allocation8 + $0x60] sm:$0xff]  ;;  %v200_v45 = vld [vmem:[#allocation8 + $0x68] sm:$0xff] }
  0x41   :  { %451 = vmatprep.subr.bf16.mxu1 %v450_v31  ;;  %v466_v43 = vpack.c.bf16 %v198_v42, %v197_v41  ;;  %v470_v46 = vpack.c.bf16 %v200_v45, %v199_v44  ;;  %v201_v47 = vld [vmem:[#allocation8 + $0x70] sm:$0xff]  ;;  %v202_v48 = vld [vmem:[#allocation8 + $0x78] sm:$0xff] }
  0x42   :  { %425 = vmatpush3.bf16.msra.mxu0 %v422_v8  ;;  %v474_v49 = vpack.c.bf16 %v202_v48, %v201_v47  ;;  %v305_v50 = vld [vmem:[%s697_s2] ss:$0 sm:$0xff] }
  0x43   :  { %427 = vmatprep.subr.bf16.mxu0 %v426_v12  ;;  %v304_v1 = vld [vmem:[%s699_s4] ss:$0 sm:$0xff] }
  0x44   :  { %453 = vmatpush3.bf16.msra.mxu1 %v450_v31 }
  0x45   :  { %455 = vmatprep.subr.bf16.mxu1 %v454_v34 }
  0x46   :  { %429 = vmatpush3.bf16.msra.mxu0 %v426_v12 }
  0x47   :  { %431 = vmatprep.subr.bf16.mxu0 %v430_v15 }
  0x48   :  { %457 = vmatpush3.bf16.msra.mxu1 %v454_v34 }
  0x49   :  { %459 = vmatprep.subr.bf16.mxu1 %v458_v37 }
  0x4a   :  { %433 = vmatpush3.bf16.msra.mxu0 %v430_v15 }
  0x4b   :  { %435 = vmatprep.subr.bf16.mxu0 %v434_v18 }
  0x4c   :  { %461 = vmatpush3.bf16.msra.mxu1 %v458_v37 }
  0x4d   :  { %463 = vmatprep.subr.bf16.mxu1 %v462_v40 }
  0x4e   :  { %437 = vmatpush3.bf16.msra.mxu0 %v434_v18 }
  0x4f   :  { %439 = vmatprep.subr.bf16.mxu0 %v438_v21 }
  0x50   :  { %465 = vmatpush3.bf16.msra.mxu1 %v462_v40 }
  0x51   :  { %467 = vmatprep.subr.bf16.mxu1 %v466_v43 }
  0x52   :  { %441 = vmatpush3.bf16.msra.mxu0 %v438_v21 }
  0x53   :  { %443 = vmatprep.subr.bf16.mxu0 %v442_v24 }
  0x54   :  { %469 = vmatpush3.bf16.msra.mxu1 %v466_v43 }
  0x55   :  { %471 = vmatprep.subr.bf16.mxu1 %v470_v46 }
  0x56   :  { %445 = vmatpush3.bf16.msra.mxu0 %v442_v24 }
  0x58   :  { %473 = vmatpush3.bf16.msra.mxu1 %v470_v46 }
  0x59   :  { %377 = vmatmul.mubr.f32.vlgmr.msra.gmra.mrb[0].mxu0 %v63_v25  ;;  %475 = vmatprep.subr.bf16.mxu1 %v474_v49 }
  0x5c   :  { %477 = vmatpush3.bf16.msra.mxu1 %v474_v49 }
 0x12c   :  { %v378_v51 = vpop.f32.mrb[0].mxu0 }
 0x12d   :  { %v168_v52 = vadd.f32 %v378_v51, %v305_v50  ;;  %v162_v53 = vpop.f32.mrb[1].mxu0 }
 0x12e   :  { %v163_v54 = vadd.f32 %v305_v50, %v162_v53 }
 0x12f   :  { %v307_v55 = vmul.f32 -1.442695, %v168_v52 }
 0x130   :  { %v306_v56 = vmul.f32 -1.442695, %v163_v54 }
 0x131   :  { %484 = vpow2.f32 %v307_v55 }
 0x132   :  { %486 = vpow2.f32 %v306_v56 }
 0x13b   :  { %v485_v57 = vpop.eup %484 }
 0x13c   :  { %v487_v58 = vpop.eup %486  ;;  %v178_v59 = vadd.f32 1.0, %v485_v57 }
 0x13d   :  { %v177_v60 = vadd.f32 1.0, %v487_v58 }
 0x13e   :  { %488 = vrcp.f32 %v178_v59 }
 0x13f   :  { %490 = vrcp.f32 %v177_v60 }
 0x148   :  { %v489_v61 = vpop.eup %488 }
 0x149   :  { %v491_v62 = vpop.eup %490  ;;  %v184_v0 = vmul.f32 %v489_v61, %v168_v52 }
 0x14a   :  { %v183_v63 = vmul.f32 %v491_v62, %v163_v54 }
 0x14c   :  { %411 = vmatprep.mubr.f32.mxu1 %v183_v63 }
 0x14d   :  { %412 = vmatmul.mubr.f32.vlgmr.msra.gmra.mrb[0].mxu1 %v184_v0 }
 0x220   :  { %v413_v2 = vpop.f32.mrb[0].mxu1 }
 0x221   :  { %v279_v3 = vadd.f32 %v413_v2, %v304_v1  ;;  %v269_v4 = vpop.f32.mrb[1].mxu1 }
 0x222   :  { %v278_v5 = vadd.f32 %v304_v1, %v269_v4 }
 0x223   :  { %285 = vst [vmem:[#allocation9 + $0x8] sm:$0xff] %v279_v3 }
 0x224   :  { %284 = vst [vmem:[#allocation9] sm:$0xff] %v278_v5 }
 0x225   :  { %569 = shalt.err (!%p566_p0)
}
 0x226   :  { %s570_s4 = scalar_lea.hbm %s700_s5, 256 }
 0x227   :  { %p571_p1 = scmp.ne.s32.totalorder %s700_s5, %s570_s4  ;;  %p574_p2 = scmp.lt.u32.totalorder %s570_s4, %s700_s5 }
 0x229   :  { %p576_p3 = pnand %p574_p2, %p571_p1 }
 0x22b   :  { %579 = shalt.err (!%p576_p3)
}
 0x22c   :  { %297 = dma.vmem_to_hbm [thread:$0]  %s292_s9, 256, %s700_s5, [#allocation5], %s588_s30, %s588_s30, %s589_s6  }
 0x22d   :  { %584 = dma.done.wait [#allocation5], 256  }
 0x22e   :  { %585 = vsyncadd [#allocation5], 4294967040 }
 0x22f   :  { %301 = vsyncpa [#allocation4], 1 }
 0x230   :  { %302 = vsyncpa [#allocation7], 1 }
 0x231   :  { %303 = vsyncpa [#allocation5], 1 }

</bundles_post_ra>
